<compile_context>
chip_gen: v7x
topology: tpu7x:2x2x1
jax: 0.10.0
libtpu: 0.0.40
codegen_flags: <defaults>
</compile_context>

<pallas_src>
import functools

import jax
import jax.numpy as jnp
from jax.experimental import pallas as pl
from jax.experimental.pallas import tpu as pltpu

LANE = 128      # lane width (last dim)
SUBLANE = 8     # f32 sublane tile (second-to-last dim)


def _round_up(x, m):
    return ((x + m - 1) // m) * m


def mlp_kernel(x_ref, w1_ref, b1_ref, w2_ref, b2_ref, w3_ref, b3_ref, out_ref):
    # x tile: (TB, K_pad) bf16.  Weights: bf16, VMEM-resident across grid steps.
    # Biases: f32.  MXU accumulates in f32; bias add / ReLU stay on the f32 VPU
    # path; casts happen only at the dot inputs.
    h1 = jnp.dot(x_ref[...], w1_ref[...], preferred_element_type=jnp.float32)
    h1 = jnp.maximum(h1 + b1_ref[...], 0.0)

    h2 = jnp.dot(h1.astype(w2_ref.dtype), w2_ref[...],
                 preferred_element_type=jnp.float32)
    h2 = jnp.maximum(h2 + b2_ref[...], 0.0)

    y = jnp.dot(h2.astype(w3_ref.dtype), w3_ref[...],
                preferred_element_type=jnp.float32)
    out_ref[...] = (y + b3_ref[...]).astype(out_ref.dtype)


@functools.partial(jax.jit, static_argnames=("block_b",))
def net_forward(x, params, *, block_b=128):
    """x: (B, n_states) float32. params: (in,out) weights + (1,out) biases (f32)."""
    w1, b1 = params["w1"], params["b1"]
    w2, b2 = params["w2"], params["b2"]
    w3, b3 = params["w3"], params["b3"]

    B, n_states = x.shape
    n_h1 = w1.shape[1]
    n_h2 = w2.shape[1]
    n_actions = w3.shape[1]

    # Layout padding (pure plumbing; zero-padded entries never affect results).
    k_pad = _round_up(n_states, SUBLANE)       # 4 -> 8: avoid degenerate K tile
    n_out_pad = _round_up(n_actions, LANE)     # 2 -> 128: lane-dense output stores
    tb = min(block_b, _round_up(B, SUBLANE))   # batch tile
    b_pad = _round_up(B, tb)

    bf16 = jnp.bfloat16
    x_p = jnp.zeros((b_pad, k_pad), bf16).at[:B, :n_states].set(x.astype(bf16))
    w1_p = jnp.zeros((k_pad, n_h1), bf16).at[:n_states, :].set(w1.astype(bf16))
    w2_p = w2.astype(bf16)
    w3_p = jnp.zeros((n_h2, n_out_pad), bf16).at[:, :n_actions].set(w3.astype(bf16))
    b3_p = jnp.zeros((1, n_out_pad), jnp.float32).at[:, :n_actions].set(b3)

    grid = (b_pad // tb,)
    const = lambda i: (0, 0)   # weights/biases: same block every step -> VMEM resident

    flops = 2 * b_pad * (k_pad * n_h1 + n_h1 * n_h2 + n_h2 * n_out_pad)
    bytes_accessed = (
        x_p.size * 2 + w1_p.size * 2 + w2_p.size * 2 + w3_p.size * 2
        + b1.size * 4 + b2.size * 4 + b3_p.size * 4
        + b_pad * n_out_pad * 4
    )

    out = pl.pallas_call(
        mlp_kernel,
        out_shape=jax.ShapeDtypeStruct((b_pad, n_out_pad), jnp.float32),
        grid_spec=pltpu.PrefetchScalarGridSpec(
            num_scalar_prefetch=0,
            grid=grid,
            in_specs=[
                pl.BlockSpec((tb, k_pad), lambda i: (i, 0)),   # x: streamed per batch tile
                pl.BlockSpec(w1_p.shape, const),
                pl.BlockSpec(b1.shape, const),
                pl.BlockSpec(w2_p.shape, const),
                pl.BlockSpec(b2.shape, const),
                pl.BlockSpec(w3_p.shape, const),
                pl.BlockSpec(b3_p.shape, const),
            ],
            out_specs=pl.BlockSpec((tb, n_out_pad), lambda i: (i, 0)),
        ),
        compiler_params=pltpu.CompilerParams(
            dimension_semantics=("parallel",),   # shard batch tiles across TCs on v7x
        ),
        cost_estimate=pl.CostEstimate(
            flops=flops, transcendentals=0, bytes_accessed=bytes_accessed),
    )(x_p, w1_p, b1, w2_p, b2, w3_p, b3_p)

    return out[:B, :n_actions]


def init_params(key, n_states, n_hidden1, n_hidden2, n_actions):
    """Deterministic init mimicking nn.Linear's U(-1/sqrt(fan_in), 1/sqrt(fan_in))."""
    def linear(k, fan_in, fan_out):
        kw, kb = jax.random.split(k)
        bound = 1.0 / jnp.sqrt(jnp.float32(fan_in))
        w = jax.random.uniform(kw, (fan_in, fan_out), jnp.float32, -bound, bound)
        b = jax.random.uniform(kb, (1, fan_out), jnp.float32, -bound, bound)
        return w, b

    k1, k2, k3 = jax.random.split(key, 3)
    w1, b1 = linear(k1, n_states, n_hidden1)
    w2, b2 = linear(k2, n_hidden1, n_hidden2)
    w3, b3 = linear(k3, n_hidden2, n_actions)
    return {"w1": w1, "b1": b1, "w2": w2, "b2": b2, "w3": w3, "b3": b3}


def ref_forward(x, params):
    """Pure-JAX reference matching the kernel's bf16-operand / f32-accumulate math."""
    bf = lambda a: a.astype(jnp.bfloat16)
    h1 = jnp.maximum(
        jnp.dot(bf(x), bf(params["w1"]), preferred_element_type=jnp.float32)
        + params["b1"], 0.0)
    h2 = jnp.maximum(
        jnp.dot(bf(h1), bf(params["w2"]), preferred_element_type=jnp.float32)
        + params["b2"], 0.0)
    return (jnp.dot(bf(h2), bf(params["w3"]), preferred_element_type=jnp.float32)
            + params["b3"])


if __name__ == "__main__":
    # CartPole-v1: observation dim 4, action dim 2.
    n_states, n_hidden1, n_hidden2, n_actions = 4, 256, 128, 2

    key = jax.random.PRNGKey(0)
    k_params, k_x = jax.random.split(key)
    params = init_params(k_params, n_states, n_hidden1, n_hidden2, n_actions)

    # DQN replay-batch-sized call: exercises the batch grid (2 tiles of 128).
    batch = 256
    x = jax.random.normal(k_x, (batch, n_states), jnp.float32)
    out = jax.block_until_ready(net_forward(x, params))
    assert out.shape == (batch, n_actions)
    ref = ref_forward(x, params)
    assert jnp.allclose(out, ref, atol=2e-2, rtol=2e-2)

    # Tiny act()-style call (B=2) exercises the ragged-batch padding path.
    out_small = jax.block_until_ready(net_forward(x[:2], params))
    assert out_small.shape == (2, n_actions)
    assert jnp.allclose(out_small, ref[:2], atol=2e-2, rtol=2e-2)

    print("KERNEL_OK")
</pallas_src>

<mosaic_0001>
module attributes {stable_mosaic.version = 11 : i64} {
  func.func @mlp_kernel(%arg0: i32, %arg1: memref<128x8xbf16, #tpu.memory_space<vmem>>, %arg2: memref<8x256xbf16, #tpu.memory_space<vmem>>, %arg3: memref<1x256xf32, #tpu.memory_space<vmem>>, %arg4: memref<256x128xbf16, #tpu.memory_space<vmem>>, %arg5: memref<1x128xf32, #tpu.memory_space<vmem>>, %arg6: memref<128x128xbf16, #tpu.memory_space<vmem>>, %arg7: memref<1x128xf32, #tpu.memory_space<vmem>>, %arg8: memref<128x128xf32, #tpu.memory_space<vmem>>) attributes {dimension_semantics = [#tpu.dimension_semantics<parallel>], iteration_bounds = array<i64: 2>, scalar_prefetch = 0 : i64, scratch_operands = 0 : i64, tpu.core_type = #tpu.core_type<tc>, window_params = [{transform_indices = @transform_0, window_bounds = array<i64: 128, 8>}, {pipeline_mode = #tpu.pipeline_mode<synchronous>, transform_indices = @transform_1, window_bounds = array<i64: 8, 256>}, {pipeline_mode = #tpu.pipeline_mode<synchronous>, transform_indices = @transform_2, window_bounds = array<i64: 1, 256>}, {pipeline_mode = #tpu.pipeline_mode<synchronous>, transform_indices = @transform_3, window_bounds = array<i64: 256, 128>}, {pipeline_mode = #tpu.pipeline_mode<synchronous>, transform_indices = @transform_4, window_bounds = array<i64: 1, 128>}, {pipeline_mode = #tpu.pipeline_mode<synchronous>, transform_indices = @transform_5, window_bounds = array<i64: 128, 128>}, {pipeline_mode = #tpu.pipeline_mode<synchronous>, transform_indices = @transform_6, window_bounds = array<i64: 1, 128>}, {transform_indices = @transform_7, window_bounds = array<i64: 128, 128>}]} {
    %c0 = arith.constant 0 : index
    %c0_0 = arith.constant 0 : index
    %0 = vector.load %arg1[%c0, %c0_0] : memref<128x8xbf16, #tpu.memory_space<vmem>>, vector<128x8xbf16>
    %c0_1 = arith.constant 0 : index
    %c0_2 = arith.constant 0 : index
    %1 = vector.load %arg2[%c0_1, %c0_2] : memref<8x256xbf16, #tpu.memory_space<vmem>>, vector<8x256xbf16>
    %cst = arith.constant dense<0.000000e+00> : vector<128x256xf32>
    %2 = tpu.matmul %0, %1, %cst {dimension_numbers = #tpu.dot_dimension_numbers<[1], [0], [0], [1], [0, 0, 1, 1], [], []>} : vector<128x8xbf16>, vector<8x256xbf16>, vector<128x256xf32> -> vector<128x256xf32>
    %c0_3 = arith.constant 0 : index
    %c0_4 = arith.constant 0 : index
    %3 = vector.load %arg3[%c0_3, %c0_4] : memref<1x256xf32, #tpu.memory_space<vmem>>, vector<1x256xf32>
    %4 = vector.broadcast %3 : vector<1x256xf32> to vector<128x256xf32>
    %5 = arith.addf %2, %4 : vector<128x256xf32>
    %cst_5 = arith.constant 0.000000e+00 : f32
    %6 = vector.broadcast %cst_5 : f32 to vector<128x256xf32>
    %7 = arith.maximumf %5, %6 : vector<128x256xf32>
    %8 = arith.truncf %7 : vector<128x256xf32> to vector<128x256xbf16>
    %c0_6 = arith.constant 0 : index
    %c0_7 = arith.constant 0 : index
    %9 = vector.load %arg4[%c0_6, %c0_7] : memref<256x128xbf16, #tpu.memory_space<vmem>>, vector<256x128xbf16>
    %cst_8 = arith.constant dense<0.000000e+00> : vector<128x128xf32>
    %10 = tpu.matmul %8, %9, %cst_8 {dimension_numbers = #tpu.dot_dimension_numbers<[1], [0], [0], [1], [0, 0, 1, 1], [], []>} : vector<128x256xbf16>, vector<256x128xbf16>, vector<128x128xf32> -> vector<128x128xf32>
    %c0_9 = arith.constant 0 : index
    %c0_10 = arith.constant 0 : index
    %11 = vector.load %arg5[%c0_9, %c0_10] : memref<1x128xf32, #tpu.memory_space<vmem>>, vector<1x128xf32>
    %12 = vector.broadcast %11 : vector<1x128xf32> to vector<128x128xf32>
    %13 = arith.addf %10, %12 : vector<128x128xf32>
    %cst_11 = arith.constant 0.000000e+00 : f32
    %14 = vector.broadcast %cst_11 : f32 to vector<128x128xf32>
    %15 = arith.maximumf %13, %14 : vector<128x128xf32>
    %16 = arith.truncf %15 : vector<128x128xf32> to vector<128x128xbf16>
    %c0_12 = arith.constant 0 : index
    %c0_13 = arith.constant 0 : index
    %17 = vector.load %arg6[%c0_12, %c0_13] : memref<128x128xbf16, #tpu.memory_space<vmem>>, vector<128x128xbf16>
    %cst_14 = arith.constant dense<0.000000e+00> : vector<128x128xf32>
    %18 = tpu.matmul %16, %17, %cst_14 {dimension_numbers = #tpu.dot_dimension_numbers<[1], [0], [0], [1], [0, 0, 1, 1], [], []>} : vector<128x128xbf16>, vector<128x128xbf16>, vector<128x128xf32> -> vector<128x128xf32>
    %c0_15 = arith.constant 0 : index
    %c0_16 = arith.constant 0 : index
    %19 = vector.load %arg7[%c0_15, %c0_16] : memref<1x128xf32, #tpu.memory_space<vmem>>, vector<1x128xf32>
    %20 = vector.broadcast %19 : vector<1x128xf32> to vector<128x128xf32>
    %21 = arith.addf %18, %20 : vector<128x128xf32>
    %c0_17 = arith.constant 0 : index
    %c0_18 = arith.constant 0 : index
    %22 = vector.load %arg8[%c0_17, %c0_18] : memref<128x128xf32, #tpu.memory_space<vmem>>, vector<128x128xf32>
    tpu.vector_store %arg8[%c0_17, %c0_18], %21 {strides = array<i32>} : memref<128x128xf32, #tpu.memory_space<vmem>>, vector<128x128xf32>,
    return
  }
  func.func @transform_0(%arg0: i32) -> (i32, i32) {
    %c0_i32 = arith.constant 0 : i32
    %c0_i32_0 = arith.constant 0 : i32
    return %arg0, %c0_i32 : i32, i32
  }
  func.func @transform_1(%arg0: i32) -> (i32, i32) {
    %c0_i32 = arith.constant 0 : i32
    %c0_i32_0 = arith.constant 0 : i32
    %c0_i32_1 = arith.constant 0 : i32
    return %c0_i32, %c0_i32_0 : i32, i32
  }
  func.func @transform_2(%arg0: i32) -> (i32, i32) {
    %c0_i32 = arith.constant 0 : i32
    %c0_i32_0 = arith.constant 0 : i32
    %c0_i32_1 = arith.constant 0 : i32
    return %c0_i32, %c0_i32_0 : i32, i32
  }
  func.func @transform_3(%arg0: i32) -> (i32, i32) {
    %c0_i32 = arith.constant 0 : i32
    %c0_i32_0 = arith.constant 0 : i32
    %c0_i32_1 = arith.constant 0 : i32
    return %c0_i32, %c0_i32_0 : i32, i32
  }
  func.func @transform_4(%arg0: i32) -> (i32, i32) {
    %c0_i32 = arith.constant 0 : i32
    %c0_i32_0 = arith.constant 0 : i32
    %c0_i32_1 = arith.constant 0 : i32
    return %c0_i32, %c0_i32_0 : i32, i32
  }
  func.func @transform_5(%arg0: i32) -> (i32, i32) {
    %c0_i32 = arith.constant 0 : i32
    %c0_i32_0 = arith.constant 0 : i32
    %c0_i32_1 = arith.constant 0 : i32
    return %c0_i32, %c0_i32_0 : i32, i32
  }
  func.func @transform_6(%arg0: i32) -> (i32, i32) {
    %c0_i32 = arith.constant 0 : i32
    %c0_i32_0 = arith.constant 0 : i32
    %c0_i32_1 = arith.constant 0 : i32
    return %c0_i32, %c0_i32_0 : i32, i32
  }
  func.func @transform_7(%arg0: i32) -> (i32, i32) {
    %c0_i32 = arith.constant 0 : i32
    %c0_i32_0 = arith.constant 0 : i32
    return %arg0, %c0_i32 : i32, i32
  }
}

</mosaic_0001>

<bundles_post_ra>
// kernel: net_forward.1
= control target key start
LH: loop header
LB: loop body
LE: loop exit
PB: predicated region body
PF: predicated region fallthrough
CT: control target
= control target key end

     0   :  { %s1306_s24 = smov 0   ;;  %s1501_s0 = inlined_call_operand.vmem [shape: bf16[256,8], index: 0, kind: input, shape index: {}]   ;;  %s1502_s1 = inlined_call_operand.vmem [shape: bf16[8,256], index: 1, kind: input, shape index: {}]   ;;  %s1503_s2 = inlined_call_operand.vmem [shape: f32[1,256], index: 2, kind: input, shape index: {}]   ;;  %s1504_s3 = inlined_call_operand.vmem [shape: bf16[256,128], index: 3, kind: input, shape index: {}]   ;;  %s1505_s4 = inlined_call_operand.vmem [shape: f32[1,128], index: 4, kind: input, shape index: {}]   ;;  %s1506_s5 = inlined_call_operand.vmem [shape: bf16[128,128], index: 5, kind: input, shape index: {}]   ;;  %s1507_s6 = inlined_call_operand.vmem [shape: f32[1,128], index: 6, kind: input, shape index: {}]   ;;  %s1508_s7 = inlined_call_operand.vmem [shape: f32[256,128], index: 7, kind: output, shape index: {}]  }
   0x1 LB: > { %s1046_s25 = sadd.s32 4294967295, %s1263_s24   ;;  %p1050_p0 = scmp.ge.s32.totalorder %s1263_s24, 1  ;;  %s1263_s24 = sphi %s1306_s24, %s17_s24  }
   0x2   : > { %p238_p1 = scmp.lt.s32.totalorder %s1263_s24, 3 }
   0x4   : > { %p239_p2 = pnand %p1050_p0, %p238_p1 }
   0x5   : > { %v299_v0 = vld [vmem:[%s1502_s1] sm:$0xff] (!%p239_p2)  ;;  %vm382_vm0 = vcmask (!%p239_p2), 1043456   ;;  %s1051_s28 = sshll.u32 (!%p239_p2), %s1046_s25, 4  ;;  %v1265_v4 = vmov (!%p239_p2), 0   ;;  %v1235_v7 = vld [vmem:[%s1504_s3 + $0x48] sm:$0xff] (!%p239_p2)   ;;  %v1237_v9 = vld [vmem:[%s1504_s3 + $0x50] sm:$0xff] (!%p239_p2)   ;;  %v302_v32 = vlaneseq (!%p239_p2) }
   0x6   : > { %242 = sbr.rel (%p239_p2) target bundleno = 736 (0x2e0), region = 48  ;;  %v1233_v1 = vld [vmem:[%s1504_s3 + $0x40] sm:$0xff] (!%p239_p2)   ;;  %v1064_v2 = vcombine.high (!%p239_p2), %v299_v0, %v299_v0  ;;  %v1063_v3 = vcombine.low (!%p239_p2), %v299_v0, %v299_v0  ;;  %421 = vmatprep.mubr.bf16.mxu0 (!%p239_p2), %v1265_v4  ;;  %p271_p3 = scmp.lt.s32.totalorder (!%p239_p2), %s1051_s28, 31  ;;  %v1236_v8 = vld [vmem:[%s1504_s3 + $0x8] sm:$0xff] (!%p239_p2)   ;;  %vm357_vm1 = vcmask (!%p239_p2), 64512   ;;  %v1238_v10 = vld [vmem:[%s1504_s3 + $0x10] sm:$0xff] (!%p239_p2)  }
   0x7   : > { %v1234_v5 = vld [vmem:[%s1504_s3] sm:$0xff] (!%p239_p2)   ;;  %1102 = vmatprep.subr.bf16.mxu1 (!%p239_p2), %v1233_v1  ;;  %v1239_v13 = vld [vmem:[%s1504_s3 + $0x58] sm:$0xff] (!%p239_p2)   ;;  %v1243_v18 = vld [vmem:[%s1504_s3 + $0x68] sm:$0xff] (!%p239_p2)   ;;  %v303_v33 = vshrl.u32 (!%p239_p2), %v302_v32, 7 }
   0x8   : > { %1065 = vmatprep.subr.msk.bf16.mxu0 (!%p239_p2), %vm382_vm0, %v1064_v2  ;;  %v384_v6 = vsel (!%p239_p2), %vm382_vm0, %v1063_v3, 0  ;;  %1103 = vmatpush3.bf16.msra.mxu1 (!%p239_p2), %v1234_v5  ;;  %v1240_v14 = vld [vmem:[%s1504_s3 + $0x18] sm:$0xff] (!%p239_p2)   ;;  %v1241_v15 = vld [vmem:[%s1504_s3 + $0x60] sm:$0xff] (!%p239_p2)   ;;  %v1244_v24 = vld [vmem:[%s1504_s3 + $0x28] sm:$0xff] (!%p239_p2)  }
   0x9   : > { %390 = vmatpush1.bf16.msra.mxu0 (!%p239_p2), %v384_v6  ;;  %1104 = vmatprep.subr.bf16.mxu1 (!%p239_p2), %v1235_v7  ;;  %v1242_v16 = vld [vmem:[%s1504_s3 + $0x20] sm:$0xff] (!%p239_p2)   ;;  %v1245_v25 = vld [vmem:[%s1504_s3 + $0x70] sm:$0xff] (!%p239_p2)   ;;  %v1247_v27 = vld [vmem:[%s1504_s3 + $0x78] sm:$0xff] (!%p239_p2)   ;;  %v304_v34 = vsub.s32 (!%p239_p2), 0, %v303_v33  ;;  %v308_v36 = vsub.s32 (!%p239_p2), 1, %v303_v33 }
   0xa   : > { %v1246_v26 = vld [vmem:[%s1504_s3 + $0x30] sm:$0xff] (!%p239_p2)   ;;  %v1248_v28 = vld [vmem:[%s1504_s3 + $0x38] sm:$0xff] (!%p239_p2)   ;;  %v1249_v29 = vld [vmem:[%s1506_s5] sm:$0xff] (!%p239_p2)  }
   0xb   : > { %v1250_v30 = vld [vmem:[%s1506_s5 + $0x8] sm:$0xff] (!%p239_p2)   ;;  %1182 = vmatprep.subr.bf16.mxu0 (!%p239_p2), %v1249_v29  ;;  %v1251_v31 = vld [vmem:[%s1506_s5 + $0x10] sm:$0xff] (!%p239_p2)   ;;  %v300_v35 = vld [vmem:[%s1503_s2] sm:$0x3] (!%p239_p2) }
   0xc   : > { %1105 = vmatpush3.bf16.msra.mxu1 (!%p239_p2), %v1236_v8  ;;  %v1401_v37 = vrot.slane (!%p239_p2), %v300_v35, %v304_v34  ;;  %v1403_v38 = vrot.slane (!%p239_p2), %v300_v35, %v308_v36 }
   0xd   : > { %s1510_s28 = smov (!%p271_p3, %s1051_s28), 31  ;;  %1106 = vmatprep.subr.bf16.mxu1 %v1237_v9 }
   0xe   : > { %s1052_s14 = sshll.u32 %s1510_s28, 2  ;;  %s1054_s20 = sshll.u32 %s1510_s28, 3 }
   0xf   : > { %s1338_s19 = scalar_lea.vmem %s1501_s0, %s1052_s14  ;;  %s1480_s26 = scalar_lea.vmem %s1508_s7, %s1054_s20 }
  0x10   : > { %v1225_v11 = vld [vmem:[%s1338_s19] sm:$0xff]   ;;  %1107 = vmatpush3.bf16.msra.mxu1 %v1238_v10  ;;  %v1226_v12 = vld [vmem:[%s1338_s19 + $0x8] sm:$0xff]   ;;  %v1227_v17 = vld [vmem:[%s1338_s19 + $0x10] sm:$0xff]  }
  0x11   : > { %1066 = vmatmul.mubr.msk.bf16.vlgmr.msra.gmra.mrb[0].mxu0 %vm357_vm1, %v1225_v11  ;;  %1108 = vmatprep.subr.bf16.mxu1 %v1239_v13  ;;  %v1228_v19 = vld [vmem:[%s1338_s19 + $0x18] sm:$0xff]   ;;  %v1229_v20 = vld [vmem:[%s1338_s19 + $0x20] sm:$0xff]   ;;  %v1230_v21 = vld [vmem:[%s1338_s19 + $0x28] sm:$0xff]  }
  0x12   : > { %431 = vmatprep.mubr.bf16.mxu0 %v1265_v4  ;;  %v1231_v22 = vld [vmem:[%s1338_s19 + $0x30] sm:$0xff]   ;;  %v1232_v23 = vld [vmem:[%s1338_s19 + $0x38] sm:$0xff]   ;;  %1183 = vmatpush3.bf16.msra.mxu0 %v1249_v29 }
  0x13   : > { %1184 = vmatprep.subr.bf16.mxu0 %v1250_v30 }
  0x14   : > { %1109 = vmatpush3.bf16.msra.mxu1 %v1240_v14 }
  0x15   : > { %1110 = vmatprep.subr.bf16.mxu1 %v1241_v15 }
  0x16   : > { %1185 = vmatpush3.bf16.msra.mxu0 %v1250_v30 }
  0x17   : > { %1186 = vmatprep.subr.bf16.mxu0 %v1251_v31 }
  0x18   : > { %1111 = vmatpush3.bf16.msra.mxu1 %v1242_v16 }
  0x19   : > { %1067 = vmatmul.mubr.msk.bf16.gmra.mrb[4].mxu0 %vm357_vm1, %v1226_v12  ;;  %1112 = vmatprep.subr.bf16.mxu1 %v1243_v18 }
  0x1a   : > { %441 = vmatprep.mubr.bf16.mxu0 %v1265_v4  ;;  %1187 = vmatpush3.bf16.msra.mxu0 %v1251_v31 }
  0x1c   : > { %1113 = vmatpush3.bf16.msra.mxu1 %v1244_v24 }
  0x1d   : > { %1114 = vmatprep.subr.bf16.mxu1 %v1245_v25 }
  0x20   : > { %1115 = vmatpush3.bf16.msra.mxu1 %v1246_v26 }
  0x21   : > { %1068 = vmatmul.mubr.msk.bf16.gmra.mrb[8].mxu0 %vm357_vm1, %v1227_v17  ;;  %1116 = vmatprep.subr.bf16.mxu1 %v1247_v27 }
  0x22   : > { %451 = vmatprep.mubr.bf16.mxu0 %v1265_v4 }
  0x24   : > { %1117 = vmatpush3.bf16.msra.mxu1 %v1248_v28 }
  0x29   : > { %1069 = vmatmul.mubr.msk.bf16.gmra.mrb[12].mxu0 %vm357_vm1, %v1228_v19 }
  0x2a   : > { %461 = vmatprep.mubr.bf16.mxu0 %v1265_v4 }
  0x31   : > { %1070 = vmatmul.mubr.msk.bf16.gmra.mrb[16].mxu0 %vm357_vm1, %v1229_v20 }
  0x32   : > { %471 = vmatprep.mubr.bf16.mxu0 %v1265_v4 }
  0x39   : > { %1071 = vmatmul.mubr.msk.bf16.gmra.mrb[20].mxu0 %vm357_vm1, %v1230_v21 }
  0x3a   : > { %481 = vmatprep.mubr.bf16.mxu0 %v1265_v4 }
  0x41   : > { %1072 = vmatmul.mubr.msk.bf16.gmra.mrb[24].mxu0 %vm357_vm1, %v1231_v22 }
  0x42   : > { %491 = vmatprep.mubr.bf16.mxu0 %v1265_v4 }
  0x49   : > { %1073 = vmatmul.mubr.msk.bf16.gmra.mrb[28].mxu0 %vm357_vm1, %v1232_v23 }
  0xe4   : > { %v423_v39 = vpop.f32.mrb[0].mxu0 }
  0xe5   : > { %v424_v40 = vadd.f32 %v423_v39, %v1401_v37  ;;  %v425_v41 = vpop.f32.mrb[1].mxu0 }
  0xe6   : > { %v426_v42 = vadd.f32 %v425_v41, %v1403_v38  ;;  %v427_v43 = vpop.f32.mrb[2].mxu0 }
  0xe7   : > { %v428_v44 = vadd.f32 %v427_v43, %v1401_v37  ;;  %v429_v45 = vpop.f32.mrb[3].mxu0  ;;  %v502_v47 = vmax.f32 %v424_v40, 0.0 }
  0xe8   : > { %v430_v46 = vadd.f32 %v429_v45, %v1403_v38  ;;  %v503_v49 = vmax.f32 %v426_v42, 0.0 }
  0xe9   : > { %v504_v48 = vmax.f32 %v428_v44, 0.0 }
  0xea   : > { %v505_v50 = vmax.f32 %v430_v46, 0.0 }
  0xeb   : > { %v534_v51 = vpack.c.bf16 %v504_v48, %v502_v47 }
  0xec   : > { %v433_v52 = vpop.f32.mrb[4].mxu0  ;;  %v535_v53 = vpack.c.bf16 %v505_v50, %v503_v49 }
  0xed   : > { %v434_v54 = vadd.f32 %v433_v52, %v1401_v37  ;;  %v435_v55 = vpop.f32.mrb[5].mxu0 }
  0xee   : > { %v436_v56 = vadd.f32 %v435_v55, %v1403_v38  ;;  %v437_v57 = vpop.f32.mrb[6].mxu0  ;;  %717 = vmatprep.mubr.bf16.mxu1 %v535_v53 }
  0xef   : > { %v438_v58 = vadd.f32 %v437_v57, %v1401_v37  ;;  %v439_v59 = vpop.f32.mrb[7].mxu0  ;;  %718 = vmatmul.mubr.bf16.vlgmr.msra.gmra.mrb[0].mxu1 %v534_v51  ;;  %v506_v61 = vmax.f32 %v434_v54, 0.0 }
  0xf0   : > { %v440_v60 = vadd.f32 %v439_v59, %v1403_v38  ;;  %v507_v63 = vmax.f32 %v436_v56, 0.0 }
  0xf1   : > { %v508_v62 = vmax.f32 %v438_v58, 0.0 }
  0xf2   : > { %v509_v0 = vmax.f32 %v440_v60, 0.0 }
  0xf3   : > { %v536_v1 = vpack.c.bf16 %v508_v62, %v506_v61 }
  0xf4   : > { %v537_v2 = vpack.c.bf16 %v509_v0, %v507_v63  ;;  %v443_v3 = vpop.f32.mrb[8].mxu0 }
  0xf5   : > { %v444_v4 = vadd.f32 %v443_v3, %v1401_v37  ;;  %v445_v5 = vpop.f32.mrb[9].mxu0 }
  0xf6   : > { %v446_v6 = vadd.f32 %v445_v5, %v1403_v38  ;;  %v447_v7 = vpop.f32.mrb[10].mxu0  ;;  %725 = vmatprep.mubr.bf16.mxu1 %v537_v2 }
  0xf7   : > { %v448_v8 = vadd.f32 %v447_v7, %v1401_v37  ;;  %v449_v9 = vpop.f32.mrb[11].mxu0  ;;  %726 = vmatmul.mubr.bf16.gmra.mrb[4].mxu1 %v536_v1  ;;  %v510_v11 = vmax.f32 %v444_v4, 0.0 }
  0xf8   : > { %v450_v10 = vadd.f32 %v449_v9, %v1403_v38  ;;  %v511_v13 = vmax.f32 %v446_v6, 0.0 }
  0xf9   : > { %v512_v12 = vmax.f32 %v448_v8, 0.0 }
  0xfa   : > { %v513_v14 = vmax.f32 %v450_v10, 0.0 }
  0xfb   : > { %v538_v15 = vpack.c.bf16 %v512_v12, %v510_v11 }
  0xfc   : > { %v539_v16 = vpack.c.bf16 %v513_v14, %v511_v13  ;;  %v453_v17 = vpop.f32.mrb[12].mxu0 }
  0xfd   : > { %v454_v18 = vadd.f32 %v453_v17, %v1401_v37  ;;  %v455_v19 = vpop.f32.mrb[13].mxu0 }
  0xfe   : > { %v456_v20 = vadd.f32 %v455_v19, %v1403_v38  ;;  %v457_v21 = vpop.f32.mrb[14].mxu0  ;;  %733 = vmatprep.mubr.bf16.mxu1 %v539_v16 }
  0xff   : > { %v458_v22 = vadd.f32 %v457_v21, %v1401_v37  ;;  %v459_v23 = vpop.f32.mrb[15].mxu0  ;;  %734 = vmatmul.mubr.bf16.gmra.mrb[8].mxu1 %v538_v15  ;;  %v514_v25 = vmax.f32 %v454_v18, 0.0 }
 0x100   : > { %v460_v24 = vadd.f32 %v459_v23, %v1403_v38  ;;  %v515_v27 = vmax.f32 %v456_v20, 0.0 }
 0x101   : > { %v516_v26 = vmax.f32 %v458_v22, 0.0 }
 0x102   : > { %v517_v28 = vmax.f32 %v460_v24, 0.0 }
 0x103   : > { %v540_v29 = vpack.c.bf16 %v516_v26, %v514_v25  ;;  %v1252_v25 = vld [vmem:[%s1506_s5 + $0x18] sm:$0xff]   ;;  %v1255_v26 = vld [vmem:[%s1506_s5 + $0x30] sm:$0xff]  }
 0x104   : > { %v541_v30 = vpack.c.bf16 %v517_v28, %v515_v27  ;;  %v463_v31 = vpop.f32.mrb[16].mxu0  ;;  %1188 = vmatprep.subr.bf16.mxu0 %v1252_v25  ;;  %v1256_v27 = vld [vmem:[%s1506_s5 + $0x38] sm:$0xff]  }
 0x105   : > { %v464_v32 = vadd.f32 %v463_v31, %v1401_v37  ;;  %v465_v33 = vpop.f32.mrb[17].mxu0  ;;  %1189 = vmatpush3.bf16.msra.mxu0 %v1252_v25 }
 0x106   : > { %v466_v34 = vadd.f32 %v465_v33, %v1403_v38  ;;  %v467_v35 = vpop.f32.mrb[18].mxu0  ;;  %741 = vmatprep.mubr.bf16.mxu1 %v541_v30 }
 0x107   : > { %v468_v36 = vadd.f32 %v467_v35, %v1401_v37  ;;  %v469_v39 = vpop.f32.mrb[19].mxu0  ;;  %742 = vmatmul.mubr.bf16.gmra.mrb[12].mxu1 %v540_v29  ;;  %v518_v41 = vmax.f32 %v464_v32, 0.0  ;;  %v1455_v29 = vld [vmem:[%s1505_s4] ss:$0 sm:$0xff] }
 0x108   : > { %v470_v40 = vadd.f32 %v469_v39, %v1403_v38  ;;  %v519_v43 = vmax.f32 %v466_v34, 0.0 }
 0x109   : > { %v520_v42 = vmax.f32 %v468_v36, 0.0 }
 0x10a   : > { %v521_v44 = vmax.f32 %v470_v40, 0.0 }
 0x10b   : > { %v542_v45 = vpack.c.bf16 %v520_v42, %v518_v41 }
 0x10c   : > { %v543_v46 = vpack.c.bf16 %v521_v44, %v519_v43  ;;  %v473_v47 = vpop.f32.mrb[20].mxu0 }
 0x10d   : > { %v474_v48 = vadd.f32 %v473_v47, %v1401_v37  ;;  %v475_v49 = vpop.f32.mrb[21].mxu0 }
 0x10e   : > { %v476_v50 = vadd.f32 %v475_v49, %v1403_v38  ;;  %v477_v51 = vpop.f32.mrb[22].mxu0  ;;  %749 = vmatprep.mubr.bf16.mxu1 %v543_v46 }
 0x10f   : > { %v478_v52 = vadd.f32 %v477_v51, %v1401_v37  ;;  %v479_v53 = vpop.f32.mrb[23].mxu0  ;;  %750 = vmatmul.mubr.bf16.gmra.mrb[16].mxu1 %v542_v45  ;;  %v522_v55 = vmax.f32 %v474_v48, 0.0 }
 0x110   : > { %v480_v54 = vadd.f32 %v479_v53, %v1403_v38  ;;  %v523_v57 = vmax.f32 %v476_v50, 0.0 }
 0x111   : > { %v524_v56 = vmax.f32 %v478_v52, 0.0 }
 0x112   : > { %v525_v58 = vmax.f32 %v480_v54, 0.0 }
 0x113   : > { %v544_v59 = vpack.c.bf16 %v524_v56, %v522_v55 }
 0x114   : > { %v545_v60 = vpack.c.bf16 %v525_v58, %v523_v57  ;;  %v483_v61 = vpop.f32.mrb[24].mxu0 }
 0x115   : > { %v484_v62 = vadd.f32 %v483_v61, %v1401_v37  ;;  %v485_v63 = vpop.f32.mrb[25].mxu0 }
 0x116   : > { %v486_v0 = vadd.f32 %v485_v63, %v1403_v38  ;;  %v487_v1 = vpop.f32.mrb[26].mxu0  ;;  %757 = vmatprep.mubr.bf16.mxu1 %v545_v60 }
 0x117   : > { %v488_v2 = vadd.f32 %v487_v1, %v1401_v37  ;;  %v489_v3 = vpop.f32.mrb[27].mxu0  ;;  %758 = vmatmul.mubr.bf16.gmra.mrb[20].mxu1 %v544_v59  ;;  %v526_v5 = vmax.f32 %v484_v62, 0.0 }
 0x118   : > { %v490_v4 = vadd.f32 %v489_v3, %v1403_v38  ;;  %v527_v7 = vmax.f32 %v486_v0, 0.0 }
 0x119   : > { %v528_v6 = vmax.f32 %v488_v2, 0.0 }
 0x11a   : > { %v529_v8 = vmax.f32 %v490_v4, 0.0 }
 0x11b   : > { %v546_v9 = vpack.c.bf16 %v528_v6, %v526_v5 }
 0x11c   : > { %v547_v10 = vpack.c.bf16 %v529_v8, %v527_v7  ;;  %v493_v11 = vpop.f32.mrb[28].mxu0 }
 0x11d   : > { %v494_v12 = vadd.f32 %v493_v11, %v1401_v37  ;;  %v495_v13 = vpop.f32.mrb[29].mxu0 }
 0x11e   : > { %v496_v14 = vadd.f32 %v495_v13, %v1403_v38  ;;  %v497_v15 = vpop.f32.mrb[30].mxu0  ;;  %765 = vmatprep.mubr.bf16.mxu1 %v547_v10 }
 0x11f   : > { %v498_v16 = vadd.f32 %v497_v15, %v1401_v37  ;;  %v499_v17 = vpop.f32.mrb[31].mxu0  ;;  %766 = vmatmul.mubr.bf16.gmra.mrb[24].mxu1 %v546_v9  ;;  %v530_v19 = vmax.f32 %v494_v12, 0.0  ;;  %v1253_v37 = vld [vmem:[%s1506_s5 + $0x20] sm:$0xff]  }
 0x120   : > { %v500_v18 = vadd.f32 %v499_v17, %v1403_v38  ;;  %v531_v21 = vmax.f32 %v496_v14, 0.0  ;;  %1190 = vmatprep.subr.bf16.mxu0 %v1253_v37  ;;  %v1254_v38 = vld [vmem:[%s1506_s5 + $0x28] sm:$0xff]  }
 0x121   : > { %v532_v20 = vmax.f32 %v498_v16, 0.0  ;;  %1191 = vmatpush3.bf16.msra.mxu0 %v1253_v37 }
 0x122   : > { %v533_v22 = vmax.f32 %v500_v18, 0.0  ;;  %1192 = vmatprep.subr.bf16.mxu0 %v1254_v38 }
 0x123   : > { %v548_v23 = vpack.c.bf16 %v532_v20, %v530_v19 }
 0x124   : > { %v549_v24 = vpack.c.bf16 %v533_v22, %v531_v21 }
 0x125   : > { %1193 = vmatpush3.bf16.msra.mxu0 %v1254_v38 }
 0x126   : > { %773 = vmatprep.mubr.bf16.mxu1 %v549_v24  ;;  %1194 = vmatprep.subr.bf16.mxu0 %v1255_v26 }
 0x127   : > { %774 = vmatmul.mubr.bf16.gmra.mrb[28].mxu1 %v548_v23 }
 0x129   : > { %1195 = vmatpush3.bf16.msra.mxu0 %v1255_v26 }
 0x12a   : > { %1196 = vmatprep.subr.bf16.mxu0 %v1256_v27 }
 0x12d   : > { %1197 = vmatpush3.bf16.msra.mxu0 %v1256_v27 }
 0x1c2   : > { %v1118_v28 = vpop.f32.mrb[0].mxu1 }
 0x1c3   : > { %v1119_v30 = vpop.f32.mrb[1].mxu1 }
 0x1c4   : > { %v1120_v31 = vadd.f32 %v1119_v30, %v1118_v28  ;;  %v1121_v32 = vpop.f32.mrb[2].mxu1 }
 0x1c5   : > { %v1122_v33 = vpop.f32.mrb[3].mxu1 }
 0x1c6   : > { %v720_v34 = vadd.f32 %v1120_v31, %v1455_v29  ;;  %v1123_v35 = vadd.f32 %v1122_v33, %v1121_v32 }
 0x1c8   : > { %v723_v36 = vadd.f32 %v1123_v35, %v1455_v29  ;;  %v782_v39 = vmax.f32 %v720_v34, 0.0 }
 0x1ca   : > { %v783_v40 = vmax.f32 %v723_v36, 0.0  ;;  %v1124_v41 = vpop.f32.mrb[4].mxu1 }
 0x1cb   : > { %v1125_v42 = vpop.f32.mrb[5].mxu1 }
 0x1cc   : > { %v1126_v43 = vadd.f32 %v1125_v42, %v1124_v41  ;;  %v1127_v44 = vpop.f32.mrb[6].mxu1  ;;  %v798_v45 = vpack.c.bf16 %v783_v40, %v782_v39 }
 0x1cd   : > { %v1128_v46 = vpop.f32.mrb[7].mxu1 }
 0x1ce   : > { %v728_v47 = vadd.f32 %v1126_v43, %v1455_v29  ;;  %v1129_v48 = vadd.f32 %v1128_v46, %v1127_v44  ;;  %1198 = vmatprep.mubr.bf16.mxu0 %v798_v45 }
 0x1d0   : > { %v731_v49 = vadd.f32 %v1129_v48, %v1455_v29  ;;  %v784_v50 = vmax.f32 %v728_v47, 0.0 }
 0x1d2   : > { %v785_v51 = vmax.f32 %v731_v49, 0.0  ;;  %v1130_v52 = vpop.f32.mrb[8].mxu1 }
 0x1d3   : > { %v1131_v53 = vpop.f32.mrb[9].mxu1 }
 0x1d4   : > { %v799_v54 = vpack.c.bf16 %v785_v51, %v784_v50  ;;  %v1132_v55 = vadd.f32 %v1131_v53, %v1130_v52  ;;  %v1133_v56 = vpop.f32.mrb[10].mxu1 }
 0x1d5   : > { %v1134_v57 = vpop.f32.mrb[11].mxu1 }
 0x1d6   : > { %v736_v58 = vadd.f32 %v1132_v55, %v1455_v29  ;;  %v1135_v59 = vadd.f32 %v1134_v57, %v1133_v56  ;;  %1199 = vmatmul.mubr.bf16.vlgmr.msra.gmra.mrb[32].mxu0 %v799_v54  ;;  %v1091_v56 = vld [vmem:[%s1507_s6] ss:$0 sm:$0xff] }
 0x1d8   : > { %v739_v60 = vadd.f32 %v1135_v59, %v1455_v29  ;;  %v786_v61 = vmax.f32 %v736_v58, 0.0 }
 0x1da   : > { %v787_v62 = vmax.f32 %v739_v60, 0.0  ;;  %v1136_v63 = vpop.f32.mrb[12].mxu1 }
 0x1db   : > { %v1137_v0 = vpop.f32.mrb[13].mxu1 }
 0x1dc   : > { %v1138_v1 = vadd.f32 %v1137_v0, %v1136_v63  ;;  %v1139_v2 = vpop.f32.mrb[14].mxu1  ;;  %v800_v3 = vpack.c.bf16 %v787_v62, %v786_v61 }
 0x1dd   : > { %v1140_v4 = vpop.f32.mrb[15].mxu1 }
 0x1de   : > { %v744_v5 = vadd.f32 %v1138_v1, %v1455_v29  ;;  %v1141_v6 = vadd.f32 %v1140_v4, %v1139_v2  ;;  %1202 = vmatprep.mubr.bf16.mxu0 %v800_v3 }
 0x1e0   : > { %v747_v7 = vadd.f32 %v1141_v6, %v1455_v29  ;;  %v788_v8 = vmax.f32 %v744_v5, 0.0 }
 0x1e2   : > { %v789_v9 = vmax.f32 %v747_v7, 0.0  ;;  %v1142_v10 = vpop.f32.mrb[16].mxu1 }
 0x1e3   : > { %v1143_v11 = vpop.f32.mrb[17].mxu1 }
 0x1e4   : > { %v1144_v12 = vadd.f32 %v1143_v11, %v1142_v10  ;;  %v1145_v13 = vpop.f32.mrb[18].mxu1  ;;  %v801_v14 = vpack.c.bf16 %v789_v9, %v788_v8 }
 0x1e5   : > { %v1146_v15 = vpop.f32.mrb[19].mxu1 }
 0x1e6   : > { %v752_v16 = vadd.f32 %v1144_v12, %v1455_v29  ;;  %v1147_v17 = vadd.f32 %v1146_v15, %v1145_v13  ;;  %1203 = vmatmul.mubr.bf16.gmra.mrb[36].mxu0 %v801_v14 }
 0x1e8   : > { %v755_v18 = vadd.f32 %v1147_v17, %v1455_v29  ;;  %v790_v19 = vmax.f32 %v752_v16, 0.0 }
 0x1ea   : > { %v791_v20 = vmax.f32 %v755_v18, 0.0  ;;  %v1148_v21 = vpop.f32.mrb[20].mxu1 }
 0x1eb   : > { %v1149_v22 = vpop.f32.mrb[21].mxu1 }
 0x1ec   : > { %v1150_v23 = vadd.f32 %v1149_v22, %v1148_v21  ;;  %v1151_v24 = vpop.f32.mrb[22].mxu1  ;;  %v802_v25 = vpack.c.bf16 %v791_v20, %v790_v19 }
 0x1ed   : > { %v1152_v37 = vpop.f32.mrb[23].mxu1 }
 0x1ee   : > { %v760_v38 = vadd.f32 %v1150_v23, %v1455_v29  ;;  %v1153_v26 = vadd.f32 %v1152_v37, %v1151_v24  ;;  %1206 = vmatprep.mubr.bf16.mxu0 %v802_v25 }
 0x1f0   : > { %v763_v27 = vadd.f32 %v1153_v26, %v1455_v29  ;;  %v792_v28 = vmax.f32 %v760_v38, 0.0 }
 0x1f2   : > { %v793_v30 = vmax.f32 %v763_v27, 0.0  ;;  %v1154_v31 = vpop.f32.mrb[24].mxu1 }
 0x1f3   : > { %v1155_v32 = vpop.f32.mrb[25].mxu1 }
 0x1f4   : > { %v1156_v33 = vadd.f32 %v1155_v32, %v1154_v31  ;;  %v1157_v34 = vpop.f32.mrb[26].mxu1  ;;  %v803_v35 = vpack.c.bf16 %v793_v30, %v792_v28 }
 0x1f5   : > { %v1158_v36 = vpop.f32.mrb[27].mxu1 }
 0x1f6   : > { %v768_v39 = vadd.f32 %v1156_v33, %v1455_v29  ;;  %v1159_v40 = vadd.f32 %v1158_v36, %v1157_v34  ;;  %1207 = vmatmul.mubr.bf16.gmra.mrb[40].mxu0 %v803_v35 }
 0x1f8   : > { %v771_v41 = vadd.f32 %v1159_v40, %v1455_v29  ;;  %v794_v42 = vmax.f32 %v768_v39, 0.0 }
 0x1fa   : > { %v795_v43 = vmax.f32 %v771_v41, 0.0  ;;  %v1160_v44 = vpop.f32.mrb[28].mxu1 }
 0x1fb   : > { %v1161_v45 = vpop.f32.mrb[29].mxu1 }
 0x1fc   : > { %v1162_v46 = vadd.f32 %v1161_v45, %v1160_v44  ;;  %v1163_v47 = vpop.f32.mrb[30].mxu1  ;;  %v804_v48 = vpack.c.bf16 %v795_v43, %v794_v42 }
 0x1fd   : > { %v1164_v49 = vpop.f32.mrb[31].mxu1 }
 0x1fe   : > { %v776_v50 = vadd.f32 %v1162_v46, %v1455_v29  ;;  %v1165_v51 = vadd.f32 %v1164_v49, %v1163_v47  ;;  %1210 = vmatprep.mubr.bf16.mxu0 %v804_v48 }
 0x200   : > { %v779_v52 = vadd.f32 %v1165_v51, %v1455_v29  ;;  %v796_v53 = vmax.f32 %v776_v50, 0.0 }
 0x202   : > { %v797_v54 = vmax.f32 %v779_v52, 0.0 }
 0x204   : > { %v805_v55 = vpack.c.bf16 %v797_v54, %v796_v53 }
 0x206   : > { %1211 = vmatmul.mubr.bf16.gmra.mrb[44].mxu0 %v805_v55 }
 0x2a9   : > { %v1200_v57 = vpop.f32.mrb[32].mxu0 }
 0x2aa   : > { %v920_v29 = vadd.f32 %v1200_v57, %v1091_v56  ;;  %v911_v58 = vpop.f32.mrb[33].mxu0 }
 0x2ab   : > { %v912_v59 = vadd.f32 %v1091_v56, %v911_v58  ;;  %v1201_v60 = vpop.f32.mrb[34].mxu0 }
 0x2ac   : > { %976 = vst [vmem:[%s1480_s26 + $0x10] sm:$0xff] %v920_v29  ;;  %v923_v61 = vadd.f32 %v1201_v60, %v1091_v56  ;;  %v914_v62 = vpop.f32.mrb[35].mxu0 }
 0x2ad   : > { %974 = vst [vmem:[%s1480_s26] sm:$0xff] %v912_v59  ;;  %v915_v63 = vadd.f32 %v1091_v56, %v914_v62 }
 0x2ae   : > { %977 = vst [vmem:[%s1480_s26 + $0x18] sm:$0xff] %v923_v61 }
 0x2af   : > { %975 = vst [vmem:[%s1480_s26 + $0x8] sm:$0xff] %v915_v63 }
 0x2b9   : > { %v1204_v0 = vpop.f32.mrb[36].mxu0 }
 0x2ba   : > { %v936_v1 = vadd.f32 %v1204_v0, %v1091_v56  ;;  %v927_v2 = vpop.f32.mrb[37].mxu0 }
 0x2bb   : > { %v928_v3 = vadd.f32 %v1091_v56, %v927_v2  ;;  %v1205_v4 = vpop.f32.mrb[38].mxu0 }
 0x2bc   : > { %980 = vst [vmem:[%s1480_s26 + $0x30] sm:$0xff] %v936_v1  ;;  %v939_v5 = vadd.f32 %v1205_v4, %v1091_v56  ;;  %v930_v6 = vpop.f32.mrb[39].mxu0 }
 0x2bd   : > { %978 = vst [vmem:[%s1480_s26 + $0x20] sm:$0xff] %v928_v3  ;;  %v931_v7 = vadd.f32 %v1091_v56, %v930_v6 }
 0x2be   : > { %981 = vst [vmem:[%s1480_s26 + $0x38] sm:$0xff] %v939_v5 }
 0x2bf   : > { %979 = vst [vmem:[%s1480_s26 + $0x28] sm:$0xff] %v931_v7 }
 0x2c9   : > { %v1208_v8 = vpop.f32.mrb[40].mxu0 }
 0x2ca   : > { %v952_v9 = vadd.f32 %v1208_v8, %v1091_v56  ;;  %v943_v10 = vpop.f32.mrb[41].mxu0 }
 0x2cb   : > { %v944_v11 = vadd.f32 %v1091_v56, %v943_v10  ;;  %v1209_v12 = vpop.f32.mrb[42].mxu0 }
 0x2cc   : > { %984 = vst [vmem:[%s1480_s26 + $0x50] sm:$0xff] %v952_v9  ;;  %v955_v13 = vadd.f32 %v1209_v12, %v1091_v56  ;;  %v946_v14 = vpop.f32.mrb[43].mxu0 }
 0x2cd   : > { %982 = vst [vmem:[%s1480_s26 + $0x40] sm:$0xff] %v944_v11  ;;  %v947_v15 = vadd.f32 %v1091_v56, %v946_v14 }
 0x2ce   : > { %985 = vst [vmem:[%s1480_s26 + $0x58] sm:$0xff] %v955_v13 }
 0x2cf   : > { %983 = vst [vmem:[%s1480_s26 + $0x48] sm:$0xff] %v947_v15 }
 0x2d9   : > { %v1212_v16 = vpop.f32.mrb[44].mxu0 }
 0x2da   : > { %v968_v17 = vadd.f32 %v1212_v16, %v1091_v56  ;;  %v959_v18 = vpop.f32.mrb[45].mxu0 }
 0x2db   : > { %v960_v19 = vadd.f32 %v1091_v56, %v959_v18  ;;  %v1213_v20 = vpop.f32.mrb[46].mxu0 }
 0x2dc   : > { %988 = vst [vmem:[%s1480_s26 + $0x70] sm:$0xff] %v968_v17  ;;  %v971_v21 = vadd.f32 %v1213_v20, %v1091_v56  ;;  %v962_v22 = vpop.f32.mrb[47].mxu0 }
 0x2dd   : > { %986 = vst [vmem:[%s1480_s26 + $0x60] sm:$0xff] %v960_v19  ;;  %v963_v23 = vadd.f32 %v1091_v56, %v962_v22 }
 0x2de   : > { %989 = vst [vmem:[%s1480_s26 + $0x78] sm:$0xff] %v971_v21 }
 0x2df   : > { %987 = vst [vmem:[%s1480_s26 + $0x68] sm:$0xff] %v963_v23 }
 0x2e0 PF: > { %s17_s24 = sadd.s32 1, %s1263_s24  }
 0x2e1   : > { %p14_p4 = scmp.ge.s32.totalorder %s17_s24, 4  }
 0x2e3   :  { %16 = sbr.rel (!%p14_p4) target bundleno = 1 (0x1), region = 78 }

</bundles_post_ra>
